<compile_context>
chip_gen: v6e
topology: v6e:2x2x1
jax: 0.10.0
libtpu: 0.0.40
codegen_flags: <defaults>
</compile_context>

<pallas_src>
import functools
import math

import jax
import jax.numpy as jnp
from jax.experimental import pallas as pl
from jax.experimental.pallas import tpu as pltpu


def _build_pos_embedding(emb_size: int, maxlen: int) -> jnp.ndarray:
    """Replicates the PyTorch buffer construction exactly (float32)."""
    den = jnp.exp(-jnp.arange(0, emb_size, 2, dtype=jnp.float32)
                  * math.log(10000.0) / emb_size)                     # (E/2,)
    pos = jnp.arange(0, maxlen, dtype=jnp.float32).reshape(maxlen, 1)  # (L,1)
    pos_times_den = pos * den                                          # (L,E/2)
    pe = jnp.zeros((maxlen, emb_size), dtype=jnp.float32)
    pe = pe.at[:, 0::2].set(jnp.sin(pos_times_den))
    pe = pe.at[:, 1::2].set(jnp.cos(pos_times_den))
    return pe[:, None, :]                                              # (L,1,E)


# ----------------------------- kernels --------------------------------------

def _pe_add_kernel(x_ref, pe_ref, o_ref, *, batch: int, emb: int):
    # x_ref/o_ref: (TS, B*E) lane-dense slab; pe_ref: (TS, E).
    # Broadcast pe across the batch with static column slices (free ref views,
    # no lane-concat / XLU work, no (TS, B*E) temporary).
    pe = pe_ref[...]
    for b in range(batch):
        sl = slice(b * emb, (b + 1) * emb)
        o_ref[:, sl] = (x_ref[:, sl] + pe).astype(o_ref.dtype)


def _pe_add_dropout_kernel(x_ref, pe_ref, bits_ref, o_ref, *,
                           batch: int, emb: int, p: float):
    # keep iff uniform >= p  <=>  bits >= floor(p * 2^32); keep-probability
    # exceeds (1 - p) by at most 2^-32 (negligible bias).
    threshold = jnp.uint32(min(int(p * 4294967296.0), 4294967295))
    scale = 1.0 / (1.0 - p)                         # trace-time constant
    pe = pe_ref[...]
    for b in range(batch):
        sl = slice(b * emb, (b + 1) * emb)
        y = x_ref[:, sl] + pe
        keep = bits_ref[:, sl] >= threshold
        o_ref[:, sl] = jnp.where(keep, y * scale, jnp.zeros_like(y)).astype(o_ref.dtype)


# ----------------------------- wrapper ---------------------------------------

def _pick_row_tile(seq_len: int, resident_row_bytes: int, sublane: int) -> int:
    """Rows per block so total double-buffered residency of all tiled streams
    stays around 24 MiB (safe on v5e/v6e/v7x); rounded to the dtype's sublane
    multiple; split whole-sequence tiles so v7x's two TensorCores share work."""
    budget_per_buffer = (24 * 1024 * 1024) // 2
    rows = max(sublane, budget_per_buffer // max(1, resident_row_bytes))
    rows = (rows // sublane) * sublane
    rows = min(seq_len, rows)
    if rows == seq_len and seq_len >= 2 * sublane:
        half = -(-((seq_len + 1) // 2) // sublane) * sublane
        rows = max(sublane, min(rows, half))
    return rows


def positional_encoding(token_embedding: jnp.ndarray,
                        pos_embedding: jnp.ndarray,
                        *,
                        dropout_p: float = 0.1,
                        training: bool = False,
                        seed: int = 0) -> jnp.ndarray:
    """token_embedding: (S, B, E); pos_embedding: (maxlen, 1, E)."""
    S, B, E = token_embedding.shape
    BE = B * E
    dtype = token_embedding.dtype
    itemsize = jnp.dtype(dtype).itemsize

    # Lane-dense 2-D view (merging trailing dims is a free reshape).  Stores
    # are unmasked (fast path) when B*E is a multiple of 128; otherwise the
    # kernel is still correct but uses masked partial stores.
    x2d = token_embedding.reshape(S, BE)
    # Cast pe once in the wrapper so the in-kernel add runs in the input dtype
    # (native bf16 VPU on v6e/v7x) and the pe HBM stream shrinks for bf16.
    pe2d = pos_embedding[:S, 0, :].astype(dtype)

    sublane = {4: 8, 2: 16, 1: 32}.get(itemsize, 8)
    use_dropout = training and dropout_p > 0.0

    # Bytes per sequence-row summed over all big tiled streams (x, out[, bits]).
    resident_row_bytes = 2 * BE * itemsize + (BE * 4 if use_dropout else 0)
    ts = _pick_row_tile(S, resident_row_bytes, sublane)
    grid = (pl.cdiv(S, ts),)

    out_shape = jax.ShapeDtypeStruct((S, BE), dtype)
    cparams = pltpu.CompilerParams(
        dimension_semantics=("parallel",),        # independent tiles -> both v7x TCs
        vmem_limit_bytes=32 * 1024 * 1024,        # > v5e's 16 MiB scoped default
    )

    x_spec = pl.BlockSpec((ts, BE), lambda i: (i, 0))
    pe_spec = pl.BlockSpec((ts, E), lambda i: (i, 0))
    out_spec = pl.BlockSpec((ts, BE), lambda i: (i, 0))

    if use_dropout:
        # TODO(synk): on-TPU this could use pltpu.prng_random_bits to avoid the
        # extra S*B*E uint32 HBM stream, but that primitive has no interpret/CPU
        # lowering; precomputed bits also make the mask tiling-independent.
        bits = jax.random.bits(jax.random.PRNGKey(seed), (S, BE), dtype=jnp.uint32)
        kernel = functools.partial(_pe_add_dropout_kernel,
                                   batch=B, emb=E, p=float(dropout_p))
        cost = pl.CostEstimate(
            flops=3 * S * BE, transcendentals=0,
            bytes_accessed=2 * S * BE * itemsize + S * E * itemsize + S * BE * 4)
        grid_spec = pltpu.PrefetchScalarGridSpec(
            num_scalar_prefetch=0, grid=grid,
            in_specs=[x_spec, pe_spec, pl.BlockSpec((ts, BE), lambda i: (i, 0))],
            out_specs=out_spec)
        out2d = pl.pallas_call(
            kernel, out_shape=out_shape, grid_spec=grid_spec,
            compiler_params=cparams, cost_estimate=cost,
        )(x2d, pe2d, bits)
    else:
        kernel = functools.partial(_pe_add_kernel, batch=B, emb=E)
        cost = pl.CostEstimate(
            flops=S * BE, transcendentals=0,
            bytes_accessed=2 * S * BE * itemsize + S * E * itemsize)
        grid_spec = pltpu.PrefetchScalarGridSpec(
            num_scalar_prefetch=0, grid=grid,
            in_specs=[x_spec, pe_spec],
            out_specs=out_spec)
        out2d = pl.pallas_call(
            kernel, out_shape=out_shape, grid_spec=grid_spec,
            compiler_params=cparams, cost_estimate=cost,
        )(x2d, pe2d)

    return out2d.reshape(S, B, E)


if __name__ == "__main__":
    key = jax.random.PRNGKey(0)

    emb_size = 32
    maxlen = 64
    seq_len = 8
    batch = 2
    dropout_p = 0.1

    pos_embedding = _build_pos_embedding(emb_size, maxlen)     # (64, 1, 32)
    x = jax.random.normal(key, (seq_len, batch, emb_size), dtype=jnp.float32)

    # Eval-mode forward (dropout = identity) -- matches the PyTorch module in .eval().
    out = positional_encoding(x, pos_embedding,
                              dropout_p=dropout_p, training=False)
    out = jax.block_until_ready(out)

    ref = x + pos_embedding[:seq_len]
    assert out.shape == (seq_len, batch, emb_size)
    assert jnp.allclose(out, ref, atol=1e-6, rtol=1e-6)

    # Training-mode check: every element is either exactly dropped (0) or
    # kept-and-scaled by 1/(1-p); drop fraction roughly matches p.
    out_tr = positional_encoding(x, pos_embedding,
                                 dropout_p=dropout_p, training=True, seed=1234)
    out_tr = jax.block_until_ready(out_tr)
    assert out_tr.shape == (seq_len, batch, emb_size)
    scaled_ref = ref / (1.0 - dropout_p)
    kept = jnp.isclose(out_tr, scaled_ref, atol=1e-5, rtol=1e-5)
    dropped = (out_tr == 0.0)
    assert bool(jnp.all(kept | dropped))
    drop_frac = float(jnp.mean(dropped.astype(jnp.float32)))
    assert 0.0 <= drop_frac < 0.4, drop_frac

    print("KERNEL_OK")
</pallas_src>

<mosaic_0001>
module attributes {stable_mosaic.version = 11 : i64} {
  func.func @_pe_add_kernel(%arg0: i32, %arg1: memref<8x64xf32, #tpu.memory_space<vmem>>, %arg2: memref<8x32xf32, #tpu.memory_space<vmem>>, %arg3: memref<8x64xf32, #tpu.memory_space<vmem>>) attributes {dimension_semantics = [#tpu.dimension_semantics<parallel>], iteration_bounds = array<i64: 1>, scalar_prefetch = 0 : i64, scratch_operands = 0 : i64, tpu.core_type = #tpu.core_type<tc>, window_params = [{transform_indices = @transform_0, window_bounds = array<i64: 8, 64>}, {transform_indices = @transform_1, window_bounds = array<i64: 8, 32>}, {transform_indices = @transform_2, window_bounds = array<i64: 8, 64>}]} {
    %c0 = arith.constant 0 : index
    %c0_0 = arith.constant 0 : index
    %0 = vector.load %arg2[%c0, %c0_0] : memref<8x32xf32, #tpu.memory_space<vmem>>, vector<8x32xf32>
    %c0_1 = arith.constant 0 : index
    %c0_2 = arith.constant 0 : index
    %1 = vector.load %arg1[%c0_1, %c0_2] : memref<8x64xf32, #tpu.memory_space<vmem>>, vector<8x32xf32>
    %2 = arith.addf %1, %0 : vector<8x32xf32>
    %c0_3 = arith.constant 0 : index
    %c0_4 = arith.constant 0 : index
    %3 = vector.load %arg3[%c0_3, %c0_4] : memref<8x64xf32, #tpu.memory_space<vmem>>, vector<8x32xf32>
    tpu.vector_store %arg3[%c0_3, %c0_4], %2 {strides = array<i32>} : memref<8x64xf32, #tpu.memory_space<vmem>>, vector<8x32xf32>,
    %c0_5 = arith.constant 0 : index
    %c32 = arith.constant 32 : index
    %4 = vector.load %arg1[%c0_5, %c32] : memref<8x64xf32, #tpu.memory_space<vmem>>, vector<8x32xf32>
    %5 = arith.addf %4, %0 : vector<8x32xf32>
    %c0_6 = arith.constant 0 : index
    %c32_7 = arith.constant 32 : index
    %6 = vector.load %arg3[%c0_6, %c32_7] : memref<8x64xf32, #tpu.memory_space<vmem>>, vector<8x32xf32>
    tpu.vector_store %arg3[%c0_6, %c32_7], %5 {strides = array<i32>} : memref<8x64xf32, #tpu.memory_space<vmem>>, vector<8x32xf32>,
    return
  }
  func.func @transform_0(%arg0: i32) -> (i32, i32) {
    %c0_i32 = arith.constant 0 : i32
    %c0_i32_0 = arith.constant 0 : i32
    return %arg0, %c0_i32 : i32, i32
  }
  func.func @transform_1(%arg0: i32) -> (i32, i32) {
    %c0_i32 = arith.constant 0 : i32
    %c0_i32_0 = arith.constant 0 : i32
    return %arg0, %c0_i32 : i32, i32
  }
  func.func @transform_2(%arg0: i32) -> (i32, i32) {
    %c0_i32 = arith.constant 0 : i32
    %c0_i32_0 = arith.constant 0 : i32
    return %arg0, %c0_i32 : i32, i32
  }
}

</mosaic_0001>

<bundles_post_ra>
// kernel: tpu_custom_call.1
= control target key start
LH: loop header
LB: loop body
LE: loop exit
PB: predicated region body
PF: predicated region fallthrough
CT: control target
= control target key end

     0   :  { %7 = vsyncpa [#allocation3], 0  ;;  %s163_s0 = inlined_call_operand.hbm [shape: f32[8,64], index: 0, kind: input, shape index: {}]   ;;  %s164_s1 = inlined_call_operand.hbm [shape: f32[8,32], index: 1, kind: input, shape index: {}]   ;;  %s165_s2 = inlined_call_operand.hbm [shape: f32[8,64], index: 2, kind: output, shape index: {}]  }
   0x1   :  { %8 = vsyncpa [#allocation6], 0 }
   0x2   :  { %9 = vsyncpa [#allocation4], 0  ;;  %s135_s9 = smov [#allocation2]   ;;  %s136_s11 = smov [#allocation5]  }
   0x3   :  { %s16_s10 = sshll.u32 %s135_s9, 4  ;;  %s26_s12 = sshll.u32 %s136_s11, 4  ;;  %s17_s10 = int_to_ptr.vmem [resolvable:$true] %s16_s10  ;;  %s27_s12 = int_to_ptr.vmem [resolvable:$true] %s26_s12 }
   0x4   :  { %s77_s13 = scalar_lea.vmem %s17_s10, 128  ;;  %p82_p1 = scmp.lt.s32.totalorder %s17_s10, %s17_s10 }
   0x5   :  { %p78_p0 = scmp.ne.s32.totalorder %s17_s10, %s77_s13  ;;  %p83_p2 = scmp.lt.s32.totalorder %s77_s13, %s77_s13 }
   0x7   :  { %p84_p3 = por %p83_p2, %p82_p1 }
   0x9   :  { %p85_p4 = pnand %p84_p3, %p78_p0 }
   0xb   :  { %88 = shalt.err (!%p85_p4)
}
   0xc   :  { %19 = dma.hbm_to_vmem [thread:$0]  %s163_s0, 128, %s17_s10, [#allocation3]  }
   0xd   :  { %s97_s16 = scalar_lea.vmem %s27_s12, 128  ;;  %p102_p6 = scmp.lt.s32.totalorder %s27_s12, %s27_s12 }
   0xe   :  { %p98_p5 = scmp.ne.s32.totalorder %s27_s12, %s97_s16  ;;  %p103_p7 = scmp.lt.s32.totalorder %s97_s16, %s97_s16 }
  0x10   :  { %p104_p8 = por %p103_p7, %p102_p6 }
  0x12   :  { %p105_p9 = pnand %p104_p8, %p98_p5 }
  0x14   :  { %108 = shalt.err (!%p105_p9)
}
  0x15   :  { %29 = dma.hbm_to_vmem [thread:$0]  %s164_s1, 128, %s27_s12, [#allocation6]  }
  0x16   :  { %129 = dma.done.wait [#allocation3], 128  }
  0x17   :  { %130 = vsyncadd [#allocation3], 4294967168 }
  0x18   :  { %131 = dma.done.wait [#allocation6], 128  }
  0x19   :  { %132 = vsyncadd [#allocation6], 4294967168  ;;  %v36_v0 = vld [vmem:[#allocation5] sm:$0xff]  ;;  %v37_v1 = vld [vmem:[#allocation2] sm:$0xff]  ;;  %vm39_vm0 = vcmask 261120   ;;  %s137_s0 = smov 32  }
  0x1a   :  { %v38_v2 = vadd.f32 %v37_v1, %v36_v0  ;;  %43 = vrot.lane.b32.xlu0 %v36_v0, %s137_s0  ;;  %s138_s19 = smov [#allocation7]   ;;  %vm47_vm1 = vcmask 523520  }
  0x1b   :  { %s55_s20 = sshll.u32 %s138_s19, 4  ;;  %s56_s20 = int_to_ptr.vmem [resolvable:$true] %s55_s20 }
  0x1c   :  { %40 = vst.msk [vmem:[#allocation7] sm:$0xff] %vm39_vm0, %v38_v2  ;;  %s109_s21 = scalar_lea.vmem %s56_s20, 128  ;;  %p114_p11 = scmp.lt.s32.totalorder %s56_s20, %s56_s20 }
  0x1d   :  { %p110_p10 = scmp.ne.s32.totalorder %s56_s20, %s109_s21  ;;  %p115_p12 = scmp.lt.s32.totalorder %s109_s21, %s109_s21 }
  0x1f   :  { %p116_p13 = por %p115_p12, %p114_p11 }
  0x21   :  { %p117_p0 = pnand %p116_p13, %p110_p10 }
  0x8c   :  { %v44_v3 = vpop.permute.xlu0 %43 }
  0x8d   :  { %v46_v4 = vadd.f32 %v44_v3, %v37_v1 }
  0x8f   :  { %48 = vst.msk [vmem:[#allocation7] sm:$0xff] %vm47_vm1, %v46_v4 }
  0x90   :  { %120 = shalt.err (!%p117_p0)
}
  0x91   :  { %58 = dma.vmem_to_hbm [thread:$0]  %s56_s20, 128, %s165_s2, [#allocation4]  }
  0x92   :  { %133 = dma.done.wait [#allocation4], 128  }
  0x93   :  { %134 = vsyncadd [#allocation4], 4294967168 }
  0x94   :  { %62 = vsyncpa [#allocation3], 1 }
  0x95   :  { %63 = vsyncpa [#allocation6], 1 }
  0x96   :  { %64 = vsyncpa [#allocation4], 1 }

</bundles_post_ra>
